<compile_context>
chip_gen: v6e
topology: v6e:2x2x1
jax: 0.10.0
libtpu: 0.0.40
codegen_flags: <defaults>
</compile_context>

<pallas_src>
import functools

import jax
import jax.numpy as jnp
from jax.experimental import pallas as pl
from jax.experimental.pallas import tpu as pltpu

NUM_CLASSES = 4  # stand-in for len(TokenCls)


def _linear_kernel(x_ref, wt_ref, b_ref, o_ref):
    # x_ref:  (TM, C)        f32   (current M tile of the flattened input)
    # wt_ref: (C, num_cls)   f32   (transposed PyTorch weight, grid-invariant)
    # b_ref:  (1, num_cls)   f32   (grid-invariant)
    # o_ref:  (TM, num_cls)  f32
    acc = jnp.dot(x_ref[...], wt_ref[...], preferred_element_type=jnp.float32)
    o_ref[...] = (acc + b_ref[...]).astype(o_ref.dtype)  # bias broadcasts over rows


def _choose_block_m(M: int, C: int, target_bytes: int = 4 << 20) -> int:
    """Pick an M tile: ~target_bytes of x per buffer, multiple of 8 sublanes."""
    tm = (target_bytes // (C * 4)) // 8 * 8
    tm = max(8, tm)
    if tm >= M:
        return M  # single block covering the full (possibly small) M
    return tm


@functools.partial(jax.jit, static_argnames=("block_m",))
def class_head_forward(x, weight, bias, *, block_m: int | None = None):
    """x: [B, N, C] f32; weight: [num_cls, C]; bias: [num_cls] -> [B, N, num_cls]."""
    B, N, C = x.shape
    num_cls = weight.shape[0]
    M = B * N

    tm = _choose_block_m(M, C) if block_m is None else min(block_m, M)

    x2 = x.reshape(M, C)
    wt = weight.T                      # (C, num_cls) — MXU-friendly orientation
    b2 = bias.reshape(1, num_cls)      # 2-D for clean VMEM layout

    grid = (pl.cdiv(M, tm),)

    out = pl.pallas_call(
        _linear_kernel,
        out_shape=jax.ShapeDtypeStruct((M, num_cls), jnp.float32),
        grid=grid,
        in_specs=[
            # x: one (tm, C) tile per grid step -> streamed, double-buffered.
            pl.BlockSpec((tm, C), lambda i: (i, 0)),
            # weight / bias: constant block index -> fetched once, stays resident.
            pl.BlockSpec((C, num_cls), lambda i: (0, 0)),
            pl.BlockSpec((1, num_cls), lambda i: (0, 0)),
        ],
        out_specs=pl.BlockSpec((tm, num_cls), lambda i: (i, 0)),
        compiler_params=pltpu.CompilerParams(
            # Pure data-parallel over M: lets v7x split the grid across its
            # two TensorCores; harmless (free) on v5e/v6e.
            dimension_semantics=("parallel",),
        ),
    )(x2, wt, b2)

    return out.reshape(B, N, num_cls)


def get_classes(logits):
    # Matches ClassHead.get_classes: argmax over the last (class) dim.
    return jnp.argmax(logits, axis=-1)


def _reference(x, weight, bias):
    return jnp.einsum("bnc,kc->bnk", x, weight) + bias


if __name__ == "__main__":
    key = jax.random.PRNGKey(0)
    k_x, k_w, k_b, k_x2 = jax.random.split(key, 4)

    # ---- small case (shapes implied by the module's [B, N, C] forward) ----
    B, N, C = 2, 8, 32
    x = jax.random.normal(k_x, (B, N, C), dtype=jnp.float32)
    # PyTorch Linear parameter shapes: weight [out, in], bias [out].
    weight = jax.random.normal(k_w, (NUM_CLASSES, C), dtype=jnp.float32) * 0.05
    bias = jax.random.normal(k_b, (NUM_CLASSES,), dtype=jnp.float32) * 0.05

    logits = class_head_forward(x, weight, bias)
    jax.block_until_ready(logits)

    ref = _reference(x, weight, bias)
    assert logits.shape == (B, N, NUM_CLASSES)
    assert jnp.allclose(logits, ref, atol=1e-5, rtol=1e-5)

    # ---- multi-tile / ragged-last-tile path (forces grid > 1) ----
    B2, N2 = 3, 40                      # M = 120, block_m = 32 -> 4 tiles, last ragged
    x_big = jax.random.normal(k_x2, (B2, N2, C), dtype=jnp.float32)
    logits_big = class_head_forward(x_big, weight, bias, block_m=32)
    jax.block_until_ready(logits_big)
    ref_big = _reference(x_big, weight, bias)
    assert logits_big.shape == (B2, N2, NUM_CLASSES)
    assert jnp.allclose(logits_big, ref_big, atol=1e-5, rtol=1e-5)

    cls = get_classes(logits)           # [B, N] int argmax, as in ClassHead.get_classes
    assert cls.shape == (B, N)

    print("KERNEL_OK")
</pallas_src>

<mosaic_0001>
module attributes {stable_mosaic.version = 11 : i64} {
  func.func @_linear_kernel(%arg0: i32, %arg1: memref<16x32xf32, #tpu.memory_space<vmem>>, %arg2: memref<32x4xf32, #tpu.memory_space<vmem>>, %arg3: memref<1x4xf32, #tpu.memory_space<vmem>>, %arg4: memref<16x4xf32, #tpu.memory_space<vmem>>) attributes {dimension_semantics = [#tpu.dimension_semantics<parallel>], iteration_bounds = array<i64: 1>, scalar_prefetch = 0 : i64, scratch_operands = 0 : i64, tpu.core_type = #tpu.core_type<tc>, window_params = [{transform_indices = @transform_0, window_bounds = array<i64: 16, 32>}, {pipeline_mode = #tpu.pipeline_mode<synchronous>, transform_indices = @transform_1, window_bounds = array<i64: 32, 4>}, {pipeline_mode = #tpu.pipeline_mode<synchronous>, transform_indices = @transform_2, window_bounds = array<i64: 1, 4>}, {transform_indices = @transform_3, window_bounds = array<i64: 16, 4>}]} {
    %c0 = arith.constant 0 : index
    %c0_0 = arith.constant 0 : index
    %0 = vector.load %arg1[%c0, %c0_0] : memref<16x32xf32, #tpu.memory_space<vmem>>, vector<16x32xf32>
    %c0_1 = arith.constant 0 : index
    %c0_2 = arith.constant 0 : index
    %1 = vector.load %arg2[%c0_1, %c0_2] : memref<32x4xf32, #tpu.memory_space<vmem>>, vector<32x4xf32>
    %cst = arith.constant dense<0.000000e+00> : vector<16x4xf32>
    %2 = tpu.matmul %0, %1, %cst {dimension_numbers = #tpu.dot_dimension_numbers<[1], [0], [0], [1], [0, 0, 1, 1], [], []>} : vector<16x32xf32>, vector<32x4xf32>, vector<16x4xf32> -> vector<16x4xf32>
    %c0_3 = arith.constant 0 : index
    %c0_4 = arith.constant 0 : index
    %3 = vector.load %arg3[%c0_3, %c0_4] : memref<1x4xf32, #tpu.memory_space<vmem>>, vector<1x4xf32>
    %4 = vector.broadcast %3 : vector<1x4xf32> to vector<16x4xf32>
    %5 = arith.addf %2, %4 : vector<16x4xf32>
    %c0_5 = arith.constant 0 : index
    %c0_6 = arith.constant 0 : index
    %6 = vector.load %arg4[%c0_5, %c0_6] : memref<16x4xf32, #tpu.memory_space<vmem>>, vector<16x4xf32>
    tpu.vector_store %arg4[%c0_5, %c0_6], %5 {strides = array<i32>} : memref<16x4xf32, #tpu.memory_space<vmem>>, vector<16x4xf32>,
    return
  }
  func.func @transform_0(%arg0: i32) -> (i32, i32) {
    %c0_i32 = arith.constant 0 : i32
    %c0_i32_0 = arith.constant 0 : i32
    return %arg0, %c0_i32 : i32, i32
  }
  func.func @transform_1(%arg0: i32) -> (i32, i32) {
    %c0_i32 = arith.constant 0 : i32
    %c0_i32_0 = arith.constant 0 : i32
    %c0_i32_1 = arith.constant 0 : i32
    return %c0_i32, %c0_i32_0 : i32, i32
  }
  func.func @transform_2(%arg0: i32) -> (i32, i32) {
    %c0_i32 = arith.constant 0 : i32
    %c0_i32_0 = arith.constant 0 : i32
    %c0_i32_1 = arith.constant 0 : i32
    return %c0_i32, %c0_i32_0 : i32, i32
  }
  func.func @transform_3(%arg0: i32) -> (i32, i32) {
    %c0_i32 = arith.constant 0 : i32
    %c0_i32_0 = arith.constant 0 : i32
    return %arg0, %c0_i32 : i32, i32
  }
}

</mosaic_0001>

<bundles_post_ra>
// kernel: class_head_forward.1
= control target key start
LH: loop header
LB: loop body
LE: loop exit
PB: predicated region body
PF: predicated region fallthrough
CT: control target
= control target key end

     0   :  { %vm27_vm0 = vcmask 261120   ;;  %vm109_vm1 = vcmask 31744   ;;  %s185_s1 = inlined_call_operand.vmem [shape: f32[32,4], index: 1, kind: input, shape index: {}]   ;;  %s186_s0 = inlined_call_operand.vmem [shape: f32[16,32], index: 0, kind: input, shape index: {}]   ;;  %s187_s2 = inlined_call_operand.vmem [shape: f32[1,4], index: 2, kind: input, shape index: {}]   ;;  %s188_s3 = inlined_call_operand.vmem [shape: f32[16,4], index: 3, kind: output, shape index: {}]  }
   0x1   :  { %v19_v0 = vld [vmem:[%s185_s1 + $0x18] sm:$0xff]  ;;  %v18_v1 = vld [vmem:[%s185_s1 + $0x10] sm:$0xff]  ;;  %v14_v2 = vld [vmem:[%s186_s0] sm:$0xff] }
   0x2   :  { %125 = vmatprep.subr.mxu0 %v19_v0  ;;  %v17_v3 = vld [vmem:[%s185_s1 + $0x8] sm:$0xff]  ;;  %133 = vmatprep.mubr.msk.f32.mxu0 %vm27_vm0, %v14_v2  ;;  %v16_v4 = vld [vmem:[%s185_s1] sm:$0xff] }
   0x3   :  { %126 = vmatpush3.msra.mxu0 %v19_v0  ;;  %v15_v5 = vld [vmem:[%s186_s0 + $0x8] sm:$0xff]  ;;  %v116_v6 = vld [vmem:[%s187_s2] ss:$0 sm:$0xff] }
   0x4   :  { %127 = vmatprep.subr.mxu0 %v18_v1 }
   0x5   :  { %128 = vmatpush3.msra.mxu0 %v18_v1 }
   0x6   :  { %129 = vmatprep.subr.mxu0 %v17_v3 }
   0x7   :  { %130 = vmatpush3.msra.mxu0 %v17_v3 }
   0x8   :  { %131 = vmatprep.subr.mxu0 %v16_v4 }
   0x9   :  { %132 = vmatpush3.msra.mxu0 %v16_v4 }
   0xa   :  { %134 = vmatmul.mubr.msk.f32.vlgmr.msra.gmra.mxu0 %vm27_vm0, %v15_v5 }
  0xca   :  { %v135_v7 = vpop.f32.mrf.mxu0 }
  0xcb   :  { %v106_v8 = vadd.f32 %v135_v7, %v116_v6 }
  0xcc   :  { %v100_v9 = vpop.f32.mrf.mxu0 }
  0xcd   :  { %111 = vst.msk [vmem:[%s188_s3 + $0x8] sm:$0xff] %vm109_vm1, %v106_v8  ;;  %v101_v10 = vadd.f32 %v116_v6, %v100_v9 }
  0xcf   :  { %110 = vst.msk [vmem:[%s188_s3] sm:$0xff] %vm109_vm1, %v101_v10 }

</bundles_post_ra>
